<compile_context>
chip_gen: v7x
topology: tpu7x:2x2x1
jax: 0.10.0
libtpu: 0.0.40
codegen_flags: <defaults>
</compile_context>

<pallas_src>
import jax
import jax.numpy as jnp
from jax.experimental import pallas as pl
from jax.experimental.pallas import tpu as pltpu


def _sigmoid(z):
    # exp lowers to the EUP; same formula in kernel and reference.
    return 1.0 / (1.0 + jnp.exp(-z))


def _scse_kernel(x_ref, w1_ref, b1_ref, w2_ref, b2_ref, ws_ref, bs_ref, out_ref):
    """One batch element per grid step.

    x_ref  : (1, HW, C)  flattened NHWC input
    w1_ref : (C, Cr)     cSE squeeze 1x1-conv weight
    b1_ref : (1, Cr)     cSE squeeze bias
    w2_ref : (Cr, C)     cSE excite 1x1-conv weight
    b2_ref : (1, C)      cSE excite bias
    ws_ref : (C, 1)      sSE 1x1-conv (C -> 1) weight, as a matmul column
    bs_ref : (1, 1)      sSE bias
    out_ref: (1, HW, C)
    """
    x = x_ref[0]                                   # (HW, C) f32 slab in VMEM
    hw = x.shape[0]
    inv_hw = 1.0 / hw                              # static python float

    # ---- cSE: global average pool -> 1x1 conv -> ReLU -> 1x1 conv -> Sigmoid
    pooled = jnp.sum(x, axis=0, keepdims=True) * inv_hw                  # (1, C)
    h = jnp.dot(pooled, w1_ref[...], preferred_element_type=jnp.float32)
    h = jnp.maximum(h + b1_ref[...], 0.0)                                # (1, Cr)
    att_c = _sigmoid(
        jnp.dot(h, w2_ref[...], preferred_element_type=jnp.float32)
        + b2_ref[...])                                                   # (1, C)

    # ---- sSE: 1x1 conv (C -> 1) on the MXU + Sigmoid
    s_logit = (jnp.dot(x, ws_ref[...], preferred_element_type=jnp.float32)
               + bs_ref[...])                                            # (HW, 1)
    att_s = _sigmoid(s_logit)

    # ---- blend: x*cSE + x*sSE == x * (att_c + att_s); gates broadcast to (HW, C)
    out_ref[0] = (x * (att_c + att_s)).astype(out_ref.dtype)


def scse_forward(x_nchw, params):
    """x_nchw: (N, C, H, W) float32 (PyTorch layout). Returns (N, C, H, W)."""
    N, C, H, W = x_nchw.shape
    HW = H * W
    Cr = params["w1"].shape[1]

    # Layout plumbing outside the kernel: NCHW -> (N, HW, C) lane-dense slabs.
    x2 = jnp.transpose(x_nchw, (0, 2, 3, 1)).reshape(N, HW, C)

    out = pl.pallas_call(
        _scse_kernel,
        out_shape=jax.ShapeDtypeStruct((N, HW, C), x_nchw.dtype),
        grid=(N,),
        in_specs=[
            pl.BlockSpec((1, HW, C), lambda n: (n, 0, 0)),   # x
            pl.BlockSpec((C, Cr), lambda n: (0, 0)),         # w1
            pl.BlockSpec((1, Cr), lambda n: (0, 0)),         # b1
            pl.BlockSpec((Cr, C), lambda n: (0, 0)),         # w2
            pl.BlockSpec((1, C), lambda n: (0, 0)),          # b2
            pl.BlockSpec((C, 1), lambda n: (0, 0)),          # ws (column)
            pl.BlockSpec((1, 1), lambda n: (0, 0)),          # bs
        ],
        out_specs=pl.BlockSpec((1, HW, C), lambda n: (n, 0, 0)),
        compiler_params=pltpu.CompilerParams(
            dimension_semantics=("parallel",)),
    )(x2, params["w1"], params["b1"], params["w2"], params["b2"],
      params["ws"], params["bs"])

    return jnp.transpose(out.reshape(N, H, W, C), (0, 3, 1, 2))


def _reference(x_nchw, params):
    """Pure-JAX reference on NCHW, mirroring the PyTorch module."""
    pooled = jnp.mean(x_nchw, axis=(2, 3))                               # (N, C)
    h = jnp.maximum(pooled @ params["w1"] + params["b1"], 0.0)           # (N, Cr)
    att_c = _sigmoid(h @ params["w2"] + params["b2"])                    # (N, C)
    ws = params["ws"].reshape(1, -1, 1, 1)                               # (1, C, 1, 1)
    att_s = _sigmoid(jnp.sum(x_nchw * ws, axis=1, keepdims=True)
                     + params["bs"][0, 0])                               # (N, 1, H, W)
    return x_nchw * att_c[:, :, None, None] + x_nchw * att_s


def init_params(key, channels, reduction=16):
    cr = channels // reduction
    ks = jax.random.split(key, 6)
    return dict(
        w1=0.1 * jax.random.normal(ks[0], (channels, cr), jnp.float32),
        b1=0.1 * jax.random.normal(ks[1], (1, cr), jnp.float32),
        w2=0.1 * jax.random.normal(ks[2], (cr, channels), jnp.float32),
        b2=0.1 * jax.random.normal(ks[3], (1, channels), jnp.float32),
        ws=0.1 * jax.random.normal(ks[4], (channels, 1), jnp.float32),
        bs=0.1 * jax.random.normal(ks[5], (1, 1), jnp.float32),
    )


if __name__ == "__main__":
    key = jax.random.PRNGKey(0)
    k_x, k_p = jax.random.split(key)

    # Small shapes consistent with the module: reduction=16 needs C >= 16;
    # C = 128 keeps the channel (lane) dimension dense on TPU.
    N, C, H, W = 2, 128, 16, 16
    x = jax.random.normal(k_x, (N, C, H, W), jnp.float32)   # NCHW, like PyTorch
    params = init_params(k_p, C, reduction=16)

    out = scse_forward(x, params)
    out = jax.block_until_ready(out)

    ref = _reference(x, params)
    assert out.shape == (N, C, H, W), out.shape
    assert jnp.allclose(out, ref, atol=1e-4, rtol=1e-4), float(
        jnp.max(jnp.abs(out - ref)))

    print("KERNEL_OK")
</pallas_src>

<mosaic_0001>
module attributes {stable_mosaic.version = 11 : i64} {
  func.func @_scse_kernel(%arg0: i32, %arg1: memref<1x256x128xf32, #tpu.memory_space<vmem>>, %arg2: memref<128x8xf32, #tpu.memory_space<vmem>>, %arg3: memref<1x8xf32, #tpu.memory_space<vmem>>, %arg4: memref<8x128xf32, #tpu.memory_space<vmem>>, %arg5: memref<1x128xf32, #tpu.memory_space<vmem>>, %arg6: memref<128x1xf32, #tpu.memory_space<vmem>>, %arg7: memref<1x1xf32, #tpu.memory_space<vmem>>, %arg8: memref<1x256x128xf32, #tpu.memory_space<vmem>>) attributes {dimension_semantics = [#tpu.dimension_semantics<parallel>], iteration_bounds = array<i64: 2>, scalar_prefetch = 0 : i64, scratch_operands = 0 : i64, tpu.core_type = #tpu.core_type<tc>, window_params = [{transform_indices = @transform_0, window_bounds = array<i64: 1, 256, 128>}, {pipeline_mode = #tpu.pipeline_mode<synchronous>, transform_indices = @transform_1, window_bounds = array<i64: 128, 8>}, {pipeline_mode = #tpu.pipeline_mode<synchronous>, transform_indices = @transform_2, window_bounds = array<i64: 1, 8>}, {pipeline_mode = #tpu.pipeline_mode<synchronous>, transform_indices = @transform_3, window_bounds = array<i64: 8, 128>}, {pipeline_mode = #tpu.pipeline_mode<synchronous>, transform_indices = @transform_4, window_bounds = array<i64: 1, 128>}, {pipeline_mode = #tpu.pipeline_mode<synchronous>, transform_indices = @transform_5, window_bounds = array<i64: 128, 1>}, {pipeline_mode = #tpu.pipeline_mode<synchronous>, transform_indices = @transform_6, window_bounds = array<i64: 1, 1>}, {transform_indices = @transform_7, window_bounds = array<i64: 1, 256, 128>}]} {
    %c0 = arith.constant 0 : index
    %c0_0 = arith.constant 0 : index
    %c0_1 = arith.constant 0 : index
    %0 = vector.load %arg1[%c0, %c0_0, %c0_1] : memref<1x256x128xf32, #tpu.memory_space<vmem>>, vector<1x256x128xf32>
    %1 = vector.shape_cast %0 : vector<1x256x128xf32> to vector<256x128xf32>
    %cst = arith.constant dense<0.000000e+00> : vector<128xf32>
    %2 = vector.multi_reduction <add>, %1, %cst [0] : vector<256x128xf32> to vector<128xf32>
    %3 = vector.shape_cast %2 : vector<128xf32> to vector<1x128xf32>
    %cst_2 = arith.constant 3.906250e-03 : f32
    %4 = vector.broadcast %cst_2 : f32 to vector<1x128xf32>
    %5 = arith.mulf %3, %4 : vector<1x128xf32>
    %c0_3 = arith.constant 0 : index
    %c0_4 = arith.constant 0 : index
    %6 = vector.load %arg2[%c0_3, %c0_4] : memref<128x8xf32, #tpu.memory_space<vmem>>, vector<128x8xf32>
    %cst_5 = arith.constant dense<0.000000e+00> : vector<1x8xf32>
    %7 = tpu.matmul %5, %6, %cst_5 {dimension_numbers = #tpu.dot_dimension_numbers<[1], [0], [0], [1], [0, 0, 1, 1], [], []>} : vector<1x128xf32>, vector<128x8xf32>, vector<1x8xf32> -> vector<1x8xf32>
    %c0_6 = arith.constant 0 : index
    %c0_7 = arith.constant 0 : index
    %8 = vector.load %arg3[%c0_6, %c0_7] : memref<1x8xf32, #tpu.memory_space<vmem>>, vector<1x8xf32>
    %9 = arith.addf %7, %8 : vector<1x8xf32>
    %cst_8 = arith.constant 0.000000e+00 : f32
    %10 = vector.broadcast %cst_8 : f32 to vector<1x8xf32>
    %11 = arith.maximumf %9, %10 : vector<1x8xf32>
    %c0_9 = arith.constant 0 : index
    %c0_10 = arith.constant 0 : index
    %12 = vector.load %arg4[%c0_9, %c0_10] : memref<8x128xf32, #tpu.memory_space<vmem>>, vector<8x128xf32>
    %cst_11 = arith.constant dense<0.000000e+00> : vector<1x128xf32>
    %13 = tpu.matmul %11, %12, %cst_11 {dimension_numbers = #tpu.dot_dimension_numbers<[1], [0], [0], [1], [0, 0, 1, 1], [], []>} : vector<1x8xf32>, vector<8x128xf32>, vector<1x128xf32> -> vector<1x128xf32>
    %c0_12 = arith.constant 0 : index
    %c0_13 = arith.constant 0 : index
    %14 = vector.load %arg5[%c0_12, %c0_13] : memref<1x128xf32, #tpu.memory_space<vmem>>, vector<1x128xf32>
    %15 = arith.addf %13, %14 : vector<1x128xf32>
    %cst_14 = arith.constant 0.000000e+00 : f32
    %16 = vector.broadcast %cst_14 : f32 to vector<1x128xf32>
    %17 = arith.subf %16, %15 : vector<1x128xf32>
    %18 = math.exp %17 : vector<1x128xf32>
    %cst_15 = arith.constant 1.000000e+00 : f32
    %19 = vector.broadcast %cst_15 : f32 to vector<1x128xf32>
    %20 = arith.addf %19, %18 : vector<1x128xf32>
    %cst_16 = arith.constant 1.000000e+00 : f32
    %21 = vector.broadcast %cst_16 : f32 to vector<1x128xf32>
    %22 = arith.divf %21, %20 : vector<1x128xf32>
    %c0_17 = arith.constant 0 : index
    %c0_18 = arith.constant 0 : index
    %23 = vector.load %arg6[%c0_17, %c0_18] : memref<128x1xf32, #tpu.memory_space<vmem>>, vector<128x1xf32>
    %cst_19 = arith.constant dense<0.000000e+00> : vector<256x1xf32>
    %24 = tpu.matmul %1, %23, %cst_19 {dimension_numbers = #tpu.dot_dimension_numbers<[1], [0], [0], [1], [0, 0, 1, 1], [], []>} : vector<256x128xf32>, vector<128x1xf32>, vector<256x1xf32> -> vector<256x1xf32>
    %c0_20 = arith.constant 0 : index
    %c0_21 = arith.constant 0 : index
    %25 = vector.load %arg7[%c0_20, %c0_21] : memref<1x1xf32, #tpu.memory_space<vmem>>, vector<1x1xf32>
    %26 = vector.broadcast %25 : vector<1x1xf32> to vector<256x1xf32>
    %27 = arith.addf %24, %26 : vector<256x1xf32>
    %cst_22 = arith.constant 0.000000e+00 : f32
    %28 = vector.broadcast %cst_22 : f32 to vector<256x1xf32>
    %29 = arith.subf %28, %27 : vector<256x1xf32>
    %30 = math.exp %29 : vector<256x1xf32>
    %cst_23 = arith.constant 1.000000e+00 : f32
    %31 = vector.broadcast %cst_23 : f32 to vector<256x1xf32>
    %32 = arith.addf %31, %30 : vector<256x1xf32>
    %cst_24 = arith.constant 1.000000e+00 : f32
    %33 = vector.broadcast %cst_24 : f32 to vector<256x1xf32>
    %34 = arith.divf %33, %32 : vector<256x1xf32>
    %35 = vector.broadcast %22 : vector<1x128xf32> to vector<256x128xf32>
    %36 = vector.broadcast %34 : vector<256x1xf32> to vector<256x128xf32>
    %37 = arith.addf %35, %36 : vector<256x128xf32>
    %38 = arith.mulf %1, %37 : vector<256x128xf32>
    %c0_25 = arith.constant 0 : index
    %c0_26 = arith.constant 0 : index
    %c0_27 = arith.constant 0 : index
    %39 = vector.load %arg8[%c0_25, %c0_26, %c0_27] : memref<1x256x128xf32, #tpu.memory_space<vmem>>, vector<1x256x128xf32>
    %40 = vector.shape_cast %39 : vector<1x256x128xf32> to vector<256x128xf32>
    %41 = vector.shape_cast %38 : vector<256x128xf32> to vector<1x256x128xf32>
    tpu.vector_store %arg8[%c0_25, %c0_26, %c0_27], %41 {strides = array<i32>} : memref<1x256x128xf32, #tpu.memory_space<vmem>>, vector<1x256x128xf32>,
    return
  }
  func.func @transform_0(%arg0: i32) -> (i32, i32, i32) {
    %c0_i32 = arith.constant 0 : i32
    %c0_i32_0 = arith.constant 0 : i32
    %c0_i32_1 = arith.constant 0 : i32
    return %arg0, %c0_i32, %c0_i32_0 : i32, i32, i32
  }
  func.func @transform_1(%arg0: i32) -> (i32, i32) {
    %c0_i32 = arith.constant 0 : i32
    %c0_i32_0 = arith.constant 0 : i32
    %c0_i32_1 = arith.constant 0 : i32
    return %c0_i32, %c0_i32_0 : i32, i32
  }
  func.func @transform_2(%arg0: i32) -> (i32, i32) {
    %c0_i32 = arith.constant 0 : i32
    %c0_i32_0 = arith.constant 0 : i32
    %c0_i32_1 = arith.constant 0 : i32
    return %c0_i32, %c0_i32_0 : i32, i32
  }
  func.func @transform_3(%arg0: i32) -> (i32, i32) {
    %c0_i32 = arith.constant 0 : i32
    %c0_i32_0 = arith.constant 0 : i32
    %c0_i32_1 = arith.constant 0 : i32
    return %c0_i32, %c0_i32_0 : i32, i32
  }
  func.func @transform_4(%arg0: i32) -> (i32, i32) {
    %c0_i32 = arith.constant 0 : i32
    %c0_i32_0 = arith.constant 0 : i32
    %c0_i32_1 = arith.constant 0 : i32
    return %c0_i32, %c0_i32_0 : i32, i32
  }
  func.func @transform_5(%arg0: i32) -> (i32, i32) {
    %c0_i32 = arith.constant 0 : i32
    %c0_i32_0 = arith.constant 0 : i32
    %c0_i32_1 = arith.constant 0 : i32
    return %c0_i32, %c0_i32_0 : i32, i32
  }
  func.func @transform_6(%arg0: i32) -> (i32, i32) {
    %c0_i32 = arith.constant 0 : i32
    %c0_i32_0 = arith.constant 0 : i32
    %c0_i32_1 = arith.constant 0 : i32
    return %c0_i32, %c0_i32_0 : i32, i32
  }
  func.func @transform_7(%arg0: i32) -> (i32, i32, i32) {
    %c0_i32 = arith.constant 0 : i32
    %c0_i32_0 = arith.constant 0 : i32
    %c0_i32_1 = arith.constant 0 : i32
    return %arg0, %c0_i32, %c0_i32_0 : i32, i32, i32
  }
}

</mosaic_0001>

<bundles_post_ra>
// kernel: tpu_custom_call.1
= control target key start
LH: loop header
LB: loop body
LE: loop exit
PB: predicated region body
PF: predicated region fallthrough
CT: control target
= control target key end

     0   :  { %s2548_s0 = inlined_call_operand.hbm [shape: f32[2,256,128], index: 0, kind: input, shape index: {}]   ;;  %s2549_s1 = inlined_call_operand.vmem [shape: f32[128,8], index: 1, kind: input, shape index: {}]   ;;  %s2550_s2 = inlined_call_operand.vmem [shape: f32[1,8], index: 2, kind: input, shape index: {}]   ;;  %s2551_s3 = inlined_call_operand.vmem [shape: f32[8,128], index: 3, kind: input, shape index: {}]   ;;  %s2552_s4 = inlined_call_operand.vmem [shape: f32[1,128], index: 4, kind: input, shape index: {}]   ;;  %s2553_s5 = inlined_call_operand.vmem [shape: f32[128,1], index: 5, kind: input, shape index: {}]   ;;  %s2554_s6 = inlined_call_operand.<no memory space> [shape: f32[1,1], index: 6, kind: input, shape index: {}]   ;;  %s2555_s7 = inlined_call_operand.hbm [shape: f32[2,256,128], index: 7, kind: output, shape index: {}]  }
   0x1   :  { %v12_v0 = vstv %s2554_s6 }
   0x2   :  { %13 = vst [vmem:[#allocation2] sm:$0x1] %v12_v0 }
   0x3   :  { %14 = vsyncpa [#allocation4], 0 }
   0x4   :  { %16 = vsyncpa [#allocation4 + $0x1], 0 }
   0x5   :  { %17 = vsyncpa [#allocation5], 0 }
   0x6   :  { %19 = vsyncpa [#allocation5 + $0x1], 0  ;;  %s1966_s26 = smov 0   ;;  %s1968_s27 = smov 0  }
   0x7   :  { %s1970_s28 = smov 0   ;;  %s1972_s29 = smov 0  }
   0x8 LB: > { %s1987_s6 = sadd.s32 4294967295, %s1911_s29   ;;  %s1326_s30 = sadd.s32 4294967294, %s1911_s29   ;;  %s1911_s29 = sphi %s1972_s29, %s2568_s29   ;;  %s1907_s28 = sphi %s1970_s28, %s2567_s28   ;;  %s1903_s27 = sphi %s1968_s27, %s2566_s27   ;;  %s1899_s26 = sphi %s1966_s26, %s2565_s26  }
   0x9   : > { %s1991_s8 = sadd.s32 1, %s1911_s29   ;;  %s32_s9 = sadd.s32 1, %s1907_s28 }
   0xa   : > { %s29_s10 = ssub.s32 %s1911_s29, %s1991_s8  ;;  %p39_p0 = scmp.ne.s32.totalorder %s1907_s28, %s1903_s27 }
   0xb   : > { %p30_p1 = scmp.eq.s32.totalorder %s29_s10, 0  ;;  %p40_p2 = scmp.eq.s32.totalorder %s1911_s29, 0 }
   0xc   : > { %p45_p3 = scmp.ne.s32.totalorder %s1903_s27, %s1899_s26  ;;  %p46_p4 = scmp.eq.s32.totalorder %s1987_s6, 0 }
   0xd   : > { %s2003_s11 = scalar_select %p30_p1, %s1907_s28, %s32_s9  }
   0xe   : > { %p2005_p5 = por %p40_p2, %p39_p0  ;;  %p2009_p6 = por %p46_p4, %p45_p3 }
   0xf   : > { %p195_p7 = scmp.eq.s32.totalorder %s1987_s6, 1  ;;  %p201_p8 = scmp.eq.s32.totalorder %s1326_s30, 1 }
  0x10   : > { %p1615_p10 = scmp.lt.s32.totalorder %s1911_s29, 2  ;;  %s239_s16 = sand.u32 1, %s1907_s28  }
  0x11   : > { %p2016_p11 = por %p195_p7, %p39_p0  ;;  %p2020_p12 = por %p201_p8, %p45_p3 }
  0x12   : > { %s1342_s17 = sshll.u32 %s1911_s29, 12  ;;  %s1329_s18 = sshll.u32 %s239_s16, 8 }
  0x13   : > { %s2559_s14 = scalar_select %p2016_p11, 1, 0 }
  0x14   : > { %s2560_s15 = scalar_select %p2020_p12, 1, 0 }
  0x15   : > { %s2029_s21 = scalar_lea.hbm %s2548_s0, %s1342_s17  ;;  %s243_s22 = scalar_lea.vmem [#allocation3], %s1329_s18 }
  0x16   : > { %s250_s23 = sshll.u32 %s243_s22, 4  ;;  %p2033_p13 = pnand %p1615_p10, %p2005_p5  ;;  %s2037_s23 = int_to_ptr.vmem [resolvable:$true] %s250_s23 }
  0x17   : > { %s2039_s25 = scalar_lea.sflag [#allocation4], %s239_s16  ;;  %s1815_s30 = scalar_lea.hbm %s2029_s21, 4096 }
  0x18   : > { %p1816_p0 = scmp.ne.s32.totalorder %s2029_s21, %s1815_s30  ;;  %p1817_p1 = pneg %p2033_p13 }
  0x19   : > { %s1820_s12 = scalar_lea.hbm %s2548_s0, 8192  ;;  %p1821_p4 = scmp.lt.u32.totalorder %s2029_s21, %s2548_s0 }
  0x1a   : > { %p1818_p2 = pnand %p1817_p1, %p1816_p0  ;;  %p1822_p5 = scmp.lt.u32.totalorder %s1820_s12, %s1815_s30 }
  0x1b   : > { %p1824_p8 = scmp.lt.u32.totalorder %s1815_s30, %s2029_s21 }
  0x1c   : > { %p1819_p3 = pneg %p1818_p2  ;;  %p1823_p7 = por %p1822_p5, %p1821_p4 }
  0x1e   : > { %p1825_p10 = por %p1824_p8, %p1823_p7 }
  0x20   : > { %p1826_p9 = pnand %p1825_p10, %p1819_p3 }
  0x22   : > { %1829 = shalt.err (!%p1826_p9)
}
  0x23   : > { %s1830_s16 = scalar_lea.vmem %s2037_s23, 4096  ;;  %s1913_s19 = smov [#allocation3]  }
  0x24   : > { %p1831_p0 = scmp.ne.s32.totalorder %s2037_s23, %s1830_s16  ;;  %s1835_s20 = sshll.u32 %s1913_s19, 4  ;;  %s1836_s20 = int_to_ptr.vmem [resolvable:$false] %s1835_s20 }
  0x25   : > { %s1837_s22 = scalar_lea.vmem %s1836_s20, 8192  ;;  %p1838_p11 = scmp.lt.s32.totalorder %s2037_s23, %s1836_s20 }
  0x26   : > { %p1833_p2 = pnand %p1831_p0, %p1817_p1  ;;  %p1839_p4 = scmp.lt.s32.totalorder %s1837_s22, %s1830_s16 }
  0x28   : > { %p1834_p12 = pneg %p1833_p2  ;;  %p1840_p5 = por %p1839_p4, %p1838_p11 }
  0x2a   : > { %p1841_p7 = pnand %p1840_p5, %p1834_p12 }
  0x2c   : > { %1844 = shalt.err (!%p1841_p7)
}
  0x2d   : > { %s1914_s30 = smov 128   ;;  %s1915_s9 = smov 8  }
  0x2e   : > { %1610 = dma.hbm_to_vmem [thread:$0]  (!%p2033_p13), %s2029_s21, 4096, %s2037_s23, %s2039_s25, %s1914_s30, %s1914_s30, %s1915_s9  }
  0x2f   : > { %p1332_p9 = scmp.ge.s32.totalorder %s1911_s29, 1  ;;  %p258_p1 = scmp.lt.s32.totalorder %s1911_s29, 3 }
  0x31   : > { %p259_p3 = pnand %p1332_p9, %p258_p1 }
  0x32   : > { %s2070_s10 = sand.u32 (!%p259_p3), 1, %s1903_s27  }
  0x33   : > { %262 = sbr.rel (%p259_p3) target bundleno = 824 (0x338), region = 48  ;;  %s1333_s12 = sshll.u32 (!%p259_p3), %s2070_s10, 8 }
  0x34   : > { %s265_s17 = scalar_lea.sflag (!%p259_p3), [#allocation4], %s2070_s10  ;;  %s2076_s18 = scalar_lea.vmem (!%p259_p3), [#allocation3], %s1333_s12 }
  0x3a   : > { %1890 = dma.done.wait (%p2009_p6), %s265_s17, 4096  }
  0x3b   : > { %1892 = vsyncadd (%p2009_p6), %s265_s17, 4294963200  ;;  %v1916_v1 = vmov 0.0|0.0   ;;  %vm1917_vm0 = vmmov 0   ;;  %v1918_v2 = vmov 0.0   ;;  %v369_v3 = vld [vmem:[%s2549_s1] sm:$0xff]  ;;  %v370_v4 = vld [vmem:[%s2549_s1 + $0x8] sm:$0xff] }
  0x3c   : > { %1531 = vmatprep.subr.bf16.mxu0 %v1916_v1  ;;  %1443 = vmatprep.mubr.msk.f32.mxu0 %vm1917_vm0, %v1918_v2  ;;  %v371_v5 = vld [vmem:[%s2549_s1 + $0x10] sm:$0xff]  ;;  %v1532_v6 = vpack.c.bf16 %v370_v4, %v369_v3  ;;  %v372_v7 = vld [vmem:[%s2549_s1 + $0x18] sm:$0xff]  ;;  %v373_v9 = vld [vmem:[%s2549_s1 + $0x20] sm:$0xff]  ;;  %vm459_vm1 = vcmask 64512   ;;  %s2389_s9 = scalar_lea.vmem [#allocation6], %s1333_s12  ;;  %s1343_s12 = sshll.u32 %s1987_s6, 12 }
  0x3d   : > { %1446 = vmatprep.subr.mxu1 %v1918_v2  ;;  %1448 = vmatprep.mubr.msk.f32.mxu1 %vm1917_vm0, %v1918_v2  ;;  %v1535_v8 = vpack.c.bf16 %v372_v7, %v371_v5  ;;  %v374_v10 = vld [vmem:[%s2549_s1 + $0x28] sm:$0xff]  ;;  %v2109_v13 = vld [vmem:[%s2076_s18 + $0x10] sm:$0xff]  ;;  %v2114_v16 = vld [vmem:[%s2076_s18 + $0x18] sm:$0xff]  ;;  %s1253_s17 = sshll.u32 %s2389_s9, 4  ;;  %s2499_s24 = scalar_lea.hbm %s2555_s7, %s1343_s12  ;;  %s2501_s17 = int_to_ptr.vmem [resolvable:$true] %s1253_s17 }
  0x3e   : > { %1533 = vmatpush3.bf16.msra.mxu0 %v1532_v6  ;;  %v2103_v11 = vld [vmem:[%s2076_s18] sm:$0xff]  ;;  %v2106_v12 = vld [vmem:[%s2076_s18 + $0x8] sm:$0xff]  ;;  %v1538_v15 = vpack.c.bf16 %v374_v10, %v373_v9  ;;  %v376_v18 = vld [vmem:[%s2549_s1 + $0x38] sm:$0xff]  ;;  %s1240_s6 = scalar_lea.sflag [#allocation5], %s2070_s10  ;;  %s1845_s25 = scalar_lea.vmem %s2501_s17, 4096 }
  0x3f   : > { %1534 = vmatprep.subr.bf16.mxu0 %v1916_v1  ;;  %v331_v14 = vadd.f32 %v2106_v12, %v2103_v11  ;;  %v375_v17 = vld [vmem:[%s2549_s1 + $0x30] sm:$0xff]  ;;  %v2125_v20 = vld [vmem:[%s2076_s18 + $0x20] sm:$0xff]  ;;  %v2144_v30 = vld [vmem:[%s2076_s18 + $0x38] sm:$0xff]  ;;  %p1846_p6 = scmp.ne.s32.totalorder %s2501_s17, %s1845_s25  ;;  %p2562_p11 = scmp.ne.s32.totalorder %s2559_s14, 0 }
  0x40   : > { %v1541_v22 = vpack.c.bf16 %v376_v18, %v375_v17  ;;  %v2129_v23 = vld [vmem:[%s2076_s18 + $0x28] sm:$0xff]  ;;  %v377_v24 = vld [vmem:[%s2549_s1 + $0x40] sm:$0xff]  ;;  %v2140_v27 = vld [vmem:[%s2076_s18 + $0x30] sm:$0xff]  ;;  %s1920_s13 = smov [#allocation6]  }
  0x41   : > { %v332_v19 = vadd.f32 %v331_v14, %v2109_v13  ;;  %v378_v25 = vld [vmem:[%s2549_s1 + $0x48] sm:$0xff]  ;;  %v379_v31 = vld [vmem:[%s2549_s1 + $0x50] sm:$0xff]  ;;  %v380_v32 = vld [vmem:[%s2549_s1 + $0x58] sm:$0xff]  ;;  %p1847_p12 = pnand %p1846_p6, %p2562_p11  ;;  %s1849_s16 = sshll.u32 %s1920_s13, 4  ;;  %s1850_s16 = int_to_ptr.vmem [resolvable:$false] %s1849_s16 }
  0x42   : > { %1536 = vmatpush3.bf16.msra.mxu0 %v1535_v8  ;;  %v1544_v29 = vpack.c.bf16 %v378_v25, %v377_v24  ;;  %v2155_v34 = vld [vmem:[%s2076_s18 + $0x40] sm:$0xff]  ;;  %v1547_v36 = vpack.c.bf16 %v380_v32, %v379_v31  ;;  %v2159_v37 = vld [vmem:[%s2076_s18 + $0x48] sm:$0xff]  ;;  %v2170_v41 = vld [vmem:[%s2076_s18 + $0x50] sm:$0xff]  ;;  %s1851_s19 = scalar_lea.vmem %s1850_s16, 8192  ;;  %p1852_p8 = scmp.lt.s32.totalorder %s2501_s17, %s1850_s16 }
  0x43   : > { %1537 = vmatprep.subr.bf16.mxu0 %v1916_v1  ;;  %v333_v21 = vadd.f32 %v332_v19, %v2114_v16  ;;  %v381_v38 = vld [vmem:[%s2549_s1 + $0x60] sm:$0xff]  ;;  %v382_v39 = vld [vmem:[%s2549_s1 + $0x68] sm:$0xff]  ;;  %v383_v45 = vld [vmem:[%s2549_s1 + $0x70] sm:$0xff]  ;;  %p1848_p13 = pneg %p1847_p12  ;;  %p1853_p10 = scmp.lt.s32.totalorder %s1851_s19, %s1845_s25 }
  0x44   : > { %v1550_v43 = vpack.c.bf16 %v382_v39, %v381_v38  ;;  %v2174_v44 = vld [vmem:[%s2076_s18 + $0x58] sm:$0xff]  ;;  %v2185_v48 = vld [vmem:[%s2076_s18 + $0x60] sm:$0xff]  ;;  %v2195_v53 = vld [vmem:[%s2076_s18 + $0x68] sm:$0xff] }
  0x45   : > { %v334_v26 = vadd.f32 %v333_v21, %v2125_v20  ;;  %v384_v46 = vld [vmem:[%s2549_s1 + $0x78] sm:$0xff]  ;;  %v539_v49 = vld [vmem:[%s2553_s5] sm:$0xff]  ;;  %v540_v50 = vld [vmem:[%s2553_s5 + $0x8] sm:$0xff]  ;;  %p1854_p0 = por %p1853_p10, %p1852_p8 }
  0x46   : > { %1539 = vmatpush3.bf16.msra.mxu0 %v1538_v15  ;;  %v1553_v52 = vpack.c.bf16 %v384_v46, %v383_v45  ;;  %v2199_v55 = vpack.c.bf16 %v540_v50, %v539_v49  ;;  %v2202_v56 = vld [vmem:[%s2076_s18 + $0x70] sm:$0xff]  ;;  %v2206_v58 = vld [vmem:[%s2076_s18 + $0x78] sm:$0xff]  ;;  %v2211_v60 = vld [vmem:[%s2076_s18 + $0x80] sm:$0xff] }
  0x47   : > { %1540 = vmatprep.subr.bf16.mxu0 %v1916_v1  ;;  %v335_v28 = vadd.f32 %v334_v26, %v2129_v23  ;;  %v2215_v62 = vld [vmem:[%s2076_s18 + $0x88] sm:$0xff]  ;;  %v2219_v0 = vld [vmem:[%s2076_s18 + $0x90] sm:$0xff]  ;;  %v2223_v2 = vld [vmem:[%s2076_s18 + $0x98] sm:$0xff]  ;;  %p1855_p2 = pnand %p1854_p0, %p1848_p13 }
  0x48   : > { %v2227_v4 = vld [vmem:[%s2076_s18 + $0xa0] sm:$0xff]  ;;  %v2231_v6 = vld [vmem:[%s2076_s18 + $0xa8] sm:$0xff]  ;;  %v2235_v8 = vld [vmem:[%s2076_s18 + $0xb0] sm:$0xff] }
  0x49   : > { %v336_v33 = vadd.f32 %v335_v28, %v2140_v27  ;;  %v2239_v10 = vld [vmem:[%s2076_s18 + $0xb8] sm:$0xff]  ;;  %v2243_v15 = vld [vmem:[%s2076_s18 + $0xc0] sm:$0xff]  ;;  %v2247_v18 = vld [vmem:[%s2076_s18 + $0xc8] sm:$0xff] }
  0x4a   : > { %1542 = vmatpush3.bf16.msra.mxu0 %v1541_v22  ;;  %v2251_v21 = vld [vmem:[%s2076_s18 + $0xd0] sm:$0xff]  ;;  %v2255_v24 = vld [vmem:[%s2076_s18 + $0xd8] sm:$0xff]  ;;  %v2259_v26 = vld [vmem:[%s2076_s18 + $0xe0] sm:$0xff] }
  0x4b   : > { %1543 = vmatprep.subr.bf16.mxu0 %v1916_v1  ;;  %v337_v35 = vadd.f32 %v336_v33, %v2144_v30  ;;  %v2267_v32 = vld [vmem:[%s2076_s18 + $0xf0] sm:$0xff] }
  0x4c   : > { %v541_v46 = vld [vmem:[%s2553_s5 + $0x10] sm:$0xff] }
  0x4d   : > { %v338_v40 = vadd.f32 %v337_v35, %v2155_v34  ;;  %v2271_v35 = vld [vmem:[%s2076_s18 + $0xf8] sm:$0xff] }
  0x4e   : > { %1545 = vmatpush3.bf16.msra.mxu0 %v1544_v29  ;;  %v2263_v29 = vld [vmem:[%s2076_s18 + $0xe8] sm:$0xff] }
  0x4f   : > { %1546 = vmatprep.subr.bf16.mxu0 %v1916_v1  ;;  %v339_v42 = vadd.f32 %v338_v40, %v2159_v37 }
  0x51   : > { %v340_v47 = vadd.f32 %v339_v42, %v2170_v41 }
  0x52   : > { %1548 = vmatpush3.bf16.msra.mxu0 %v1547_v36 }
  0x53   : > { %1549 = vmatprep.subr.bf16.mxu0 %v1916_v1  ;;  %v341_v51 = vadd.f32 %v340_v47, %v2174_v44  ;;  %v542_v47 = vld [vmem:[%s2553_s5 + $0x18] sm:$0xff] }
  0x55   : > { %v342_v54 = vadd.f32 %v341_v51, %v2185_v48  ;;  %v1559_v51 = vpack.c.bf16 %v542_v47, %v541_v46 }
  0x56   : > { %1551 = vmatpush3.bf16.msra.mxu0 %v1550_v43 }
  0x57   : > { %1552 = vmatprep.subr.bf16.mxu0 %v1916_v1  ;;  %v343_v57 = vadd.f32 %v342_v54, %v2195_v53  ;;  %v544_v54 = vld [vmem:[%s2553_s5 + $0x28] sm:$0xff] }
  0x59   : > { %v344_v59 = vadd.f32 %v343_v57, %v2202_v56 }
  0x5a   : > { %1554 = vmatpush3.bf16.msra.mxu0 %v1553_v52  ;;  %v543_v52 = vld [vmem:[%s2553_s5 + $0x20] sm:$0xff] }
  0x5b   : > { %1556 = vmatprep.subr.bf16.mxu0 %v2199_v55  ;;  %v345_v61 = vadd.f32 %v344_v59, %v2206_v58  ;;  %v1563_v57 = vpack.c.bf16 %v544_v54, %v543_v52  ;;  %v545_v59 = vld [vmem:[%s2553_s5 + $0x30] sm:$0xff] }
  0x5d   : > { %v346_v63 = vadd.f32 %v345_v61, %v2211_v60  ;;  %v546_v61 = vld [vmem:[%s2553_s5 + $0x38] sm:$0xff] }
  0x5f   : > { %v347_v1 = vadd.f32 %v346_v63, %v2215_v62  ;;  %v1567_v63 = vpack.c.bf16 %v546_v61, %v545_v59 }
  0x61   : > { %v348_v3 = vadd.f32 %v347_v1, %v2219_v0  ;;  %v547_v1 = vld [vmem:[%s2553_s5 + $0x40] sm:$0xff] }
  0x63   : > { %v349_v5 = vadd.f32 %v348_v3, %v2223_v2  ;;  %v548_v3 = vld [vmem:[%s2553_s5 + $0x48] sm:$0xff] }
  0x65   : > { %v350_v7 = vadd.f32 %v349_v5, %v2227_v4  ;;  %v1571_v5 = vpack.c.bf16 %v548_v3, %v547_v1 }
  0x67   : > { %v351_v9 = vadd.f32 %v350_v7, %v2231_v6  ;;  %v549_v7 = vld [vmem:[%s2553_s5 + $0x50] sm:$0xff] }
  0x69   : > { %v352_v14 = vadd.f32 %v351_v9, %v2235_v8  ;;  %v550_v9 = vld [vmem:[%s2553_s5 + $0x58] sm:$0xff] }
  0x6b   : > { %v353_v17 = vadd.f32 %v352_v14, %v2239_v10  ;;  %v1575_v14 = vpack.c.bf16 %v550_v9, %v549_v7 }
  0x6d   : > { %v354_v19 = vadd.f32 %v353_v17, %v2243_v15  ;;  %v551_v17 = vld [vmem:[%s2553_s5 + $0x60] sm:$0xff] }
  0x6f   : > { %v355_v22 = vadd.f32 %v354_v19, %v2247_v18  ;;  %v552_v19 = vld [vmem:[%s2553_s5 + $0x68] sm:$0xff] }
  0x71   : > { %v356_v25 = vadd.f32 %v355_v22, %v2251_v21  ;;  %v1579_v22 = vpack.c.bf16 %v552_v19, %v551_v17 }
  0x73   : > { %v357_v28 = vadd.f32 %v356_v25, %v2255_v24  ;;  %v553_v25 = vld [vmem:[%s2553_s5 + $0x70] sm:$0xff] }
  0x75   : > { %v358_v31 = vadd.f32 %v357_v28, %v2259_v26  ;;  %v554_v28 = vld [vmem:[%s2553_s5 + $0x78] sm:$0xff] }
  0x77   : > { %v359_v33 = vadd.f32 %v358_v31, %v2263_v29  ;;  %v1583_v31 = vpack.c.bf16 %v554_v28, %v553_v25 }
  0x79   : > { %v360_v36 = vadd.f32 %v359_v33, %v2267_v32  ;;  %v457_v33 = vld [vmem:[%s2551_s3] sm:$0xff] }
  0x7a   : > { %1447 = vmatpush3.msra.mxu1 %v457_v33 }
  0x7b   : > { %v361_v38 = vadd.f32 %v360_v36, %v2271_v35  ;;  %1587 = vmatprep.subr.bf16.mxu1 %v2199_v55  ;;  %v1919_v36 = vmov 0  }
  0x7c   : > { %1658 = vset.pattern.permute.xlu1 %v1919_v36  ;;  %1657 = vset.pattern.permute.xlu0 %v1919_v36 }
  0x7d   : > { %v362_v39 = vrot.slane %v361_v38, 4 }
  0x7f   : > { %v363_v40 = vadd.f32 %v362_v39, %v361_v38  ;;  %v385_v38 = vld [vmem:[%s2550_s2] sm:$0x1] }
  0x81   : > { %v364_v42 = vrot.slane %v363_v40, 2 }
  0x83   : > { %v365_v43 = vadd.f32 %v364_v42, %v363_v40 }
  0x85   : > { %v366_v45 = vrot.slane %v365_v43, 1 }
  0x87   : > { %v367_v49 = vadd.f32 %v366_v45, %v365_v43  ;;  %v2335_v45 = vld [vmem:[#allocation2] ss:$0 sm:$0xff] }
  0x89   : > { %v368_v50 = vmul.f32 0.00390625, %v367_v49 }
  0x8b   : > { %1444 = vmatmul.mubr.f32.vlgmr.msra.gmra.mrb[0].mxu0 %v368_v50 }
  0x8c   : > { %1558 = vmatpush3.bf16.msra.mxu0 %v2199_v55  ;;  %1483 = vmatprep.mubr.f32.mxu0 %v2103_v11 }
  0x8d   : > { %1560 = vmatprep.subr.bf16.mxu0 %v1559_v51 }
  0x90   : > { %1562 = vmatpush3.bf16.msra.mxu0 %v1559_v51 }
  0x91   : > { %1564 = vmatprep.subr.bf16.mxu0 %v1563_v57 }
  0x94   : > { %1566 = vmatpush3.bf16.msra.mxu0 %v1563_v57 }
  0x95   : > { %1568 = vmatprep.subr.bf16.mxu0 %v1567_v63 }
  0x98   : > { %1570 = vmatpush3.bf16.msra.mxu0 %v1567_v63 }
  0x99   : > { %1572 = vmatprep.subr.bf16.mxu0 %v1571_v5 }
  0x9c   : > { %1574 = vmatpush3.bf16.msra.mxu0 %v1571_v5 }
  0x9d   : > { %1576 = vmatprep.subr.bf16.mxu0 %v1575_v14 }
  0xa0   : > { %1578 = vmatpush3.bf16.msra.mxu0 %v1575_v14 }
  0xa1   : > { %1580 = vmatprep.subr.bf16.mxu0 %v1579_v22 }
  0xa4   : > { %1582 = vmatpush3.bf16.msra.mxu0 %v1579_v22 }
  0xa5   : > { %1584 = vmatprep.subr.bf16.mxu0 %v1583_v31 }
  0xa8   : > { %1586 = vmatpush3.bf16.msra.mxu0 %v1583_v31 }
  0xab   : > { %1484 = vmatmul.mubr.f32.vlgmr.msra.gmra.mrb[2].mxu0 %v2106_v12 }
  0xac   : > { %1486 = vmatprep.mubr.f32.mxu0 %v2109_v13 }
  0xaf   : > { %1487 = vmatmul.mubr.f32.gmra.mrb[4].mxu0 %v2114_v16 }
  0xb0   : > { %1489 = vmatprep.mubr.f32.mxu0 %v2125_v20 }
  0xb3   : > { %1490 = vmatmul.mubr.f32.gmra.mrb[6].mxu0 %v2129_v23 }
  0xb4   : > { %1492 = vmatprep.mubr.f32.mxu0 %v2140_v27 }
  0xb7   : > { %1493 = vmatmul.mubr.f32.gmra.mrb[8].mxu0 %v2144_v30 }
 0x15e   : > { %v452_v39 = vpop.f32.mrb[0].mxu0 }
 0x15f   : > { %v453_v40 = vadd.f32 %v452_v39, %v385_v38  ;;  %v1445_v42 = vpop.f32.mrb[1].mxu0 }
 0x161   : > { %v456_v43 = vmax.f32 %v453_v40, 0.0 }
 0x163   : > { %1449 = vmatmul.mubr.msk.f32.vlgmr.msra.gmra.mrb[0].mxu1 %vm459_vm1, %v456_v43 }
 0x164   : > { %1595 = vmatpush3.bf16.msra.mxu1 %v2199_v55  ;;  %1495 = vmatprep.mubr.f32.mxu1 %v2155_v34 }
 0x165   : > { %1588 = vmatprep.subr.bf16.mxu1 %v1559_v51 }
 0x168   : > { %1596 = vmatpush3.bf16.msra.mxu1 %v1559_v51 }
 0x169   : > { %1589 = vmatprep.subr.bf16.mxu1 %v1563_v57 }
 0x16c   : > { %1597 = vmatpush3.bf16.msra.mxu1 %v1563_v57 }
 0x16d   : > { %1590 = vmatprep.subr.bf16.mxu1 %v1567_v63 }
 0x170   : > { %1598 = vmatpush3.bf16.msra.mxu1 %v1567_v63 }
 0x171   : > { %1591 = vmatprep.subr.bf16.mxu1 %v1571_v5 }
 0x174   : > { %1599 = vmatpush3.bf16.msra.mxu1 %v1571_v5 }
 0x175   : > { %1592 = vmatprep.subr.bf16.mxu1 %v1575_v14 }
 0x178   : > { %1600 = vmatpush3.bf16.msra.mxu1 %v1575_v14 }
 0x179   : > { %1593 = vmatprep.subr.bf16.mxu1 %v1579_v22 }
 0x17c   : > { %1601 = vmatpush3.bf16.msra.mxu1 %v1579_v22 }
 0x17d   : > { %1594 = vmatprep.subr.bf16.mxu1 %v1583_v31 }
 0x17e   : > { %v1485_v46 = vpop.f32.mrb[2].mxu0 }
 0x17f   : > { %v634_v55 = vadd.f32 %v1485_v46, %v2335_v45  ;;  %v628_v47 = vpop.f32.mrb[3].mxu0 }
 0x180   : > { %1602 = vmatpush3.bf16.msra.mxu1 %v1583_v31  ;;  %v629_v34 = vadd.f32 %v2335_v45, %v628_v47 }
 0x181   : > { %v788_v49 = vsub.f32 0.0, %v634_v55 }
 0x182   : > { %v787_v50 = vsub.f32 0.0, %v629_v34  ;;  %v1488_v51 = vpop.f32.mrb[4].mxu0 }
 0x183   : > { %1496 = vmatmul.mubr.f32.vlgmr.msra.gmra.mrb[2].mxu1 %v2159_v37  ;;  %v821_v52 = vmul.f32 1.442695, %v788_v49  ;;  %v644_v54 = vadd.f32 %v1488_v51, %v2335_v45  ;;  %v638_v57 = vpop.f32.mrb[5].mxu0 }
 0x184   : > { %1498 = vmatprep.mubr.f32.mxu1 %v2170_v41  ;;  %v819_v59 = vmul.f32 1.442695, %v787_v50  ;;  %v639_v61 = vadd.f32 %v2335_v45, %v638_v57 }
 0x185   : > { %1659 = vpow2.f32 %v821_v52  ;;  %v790_v63 = vsub.f32 0.0, %v644_v54 }
 0x186   : > { %1661 = vpow2.f32 %v819_v59  ;;  %v789_v1 = vsub.f32 0.0, %v639_v61  ;;  %v1491_v3 = vpop.f32.mrb[6].mxu0 }
 0x187   : > { %1499 = vmatmul.mubr.f32.gmra.mrb[4].mxu1 %v2174_v44  ;;  %v825_v5 = vmul.f32 1.442695, %v790_v63  ;;  %v654_v7 = vadd.f32 %v1491_v3, %v2335_v45  ;;  %v648_v37 = vpop.f32.mrb[7].mxu0 }
 0x188   : > { %1501 = vmatprep.mubr.f32.mxu1 %v2185_v48  ;;  %v823_v9 = vmul.f32 1.442695, %v789_v1  ;;  %v649_v14 = vadd.f32 %v2335_v45, %v648_v37  ;;  %v979_v1 = vlaneseq }
 0x189   : > { %1663 = vpow2.f32 %v825_v5  ;;  %v792_v41 = vsub.f32 0.0, %v654_v7 }
 0x18a   : > { %1665 = vpow2.f32 %v823_v9  ;;  %v791_v17 = vsub.f32 0.0, %v649_v14  ;;  %v1494_v19 = vpop.f32.mrb[8].mxu0  ;;  %v980_v5 = vshrl.u32 %v979_v1, 7 }
 0x18b   : > { %1502 = vmatmul.mubr.f32.gmra.mrb[6].mxu1 %v2195_v53  ;;  %v829_v22 = vmul.f32 1.442695, %v792_v41  ;;  %v664_v25 = vadd.f32 %v1494_v19, %v2335_v45  ;;  %v658_v44 = vpop.f32.mrb[9].mxu0 }
 0x18c   : > { %1504 = vmatprep.mubr.f32.mxu1 %v2202_v56  ;;  %v827_v28 = vmul.f32 1.442695, %v791_v17  ;;  %v659_v31 = vadd.f32 %v2335_v45, %v658_v44 }
 0x18d   : > { %1667 = vpow2.f32 %v829_v22  ;;  %v794_v48 = vsub.f32 0.0, %v664_v25 }
 0x18e   : > { %1669 = vpow2.f32 %v827_v28  ;;  %v793_v33 = vsub.f32 0.0, %v659_v31 }
 0x18f   : > { %v1660_v36 = vpop.eup %1659  ;;  %1505 = vmatmul.mubr.f32.gmra.mrb[8].mxu1 %v2206_v58  ;;  %v833_v38 = vmul.f32 1.442695, %v794_v48 }
 0x190   : > { %v1662_v39 = vpop.eup %1661  ;;  %1507 = vmatprep.mubr.f32.mxu1 %v2211_v60  ;;  %v884_v53 = vadd.f32 1.0, %v1660_v36  ;;  %v831_v40 = vmul.f32 1.442695, %v793_v33 }
 0x191   : > { %v883_v42 = vadd.f32 1.0, %v1662_v39  ;;  %1671 = vpow2.f32 %v833_v38 }
 0x192   : > { %1673 = vrcp.f32 %v884_v53 }
 0x193   : > { %v1664_v56 = vpop.eup %1663  ;;  %1508 = vmatmul.mubr.f32.gmra.mrb[10].mxu1 %v2215_v62  ;;  %1675 = vrcp.f32 %v883_v42 }
 0x194   : > { %v1666_v43 = vpop.eup %1665  ;;  %1510 = vmatprep.mubr.f32.mxu1 %v2219_v0  ;;  %v886_v46 = vadd.f32 1.0, %v1664_v56  ;;  %1677 = vpow2.f32 %v831_v40 }
 0x195   : > { %v885_v55 = vadd.f32 1.0, %v1666_v43 }
 0x196   : > { %1679 = vrcp.f32 %v886_v46 }
 0x197   : > { %v1668_v58 = vpop.eup %1667  ;;  %1511 = vmatmul.mubr.f32.gmra.mrb[12].mxu1 %v2223_v2  ;;  %1681 = vrcp.f32 %v885_v55 }
 0x198   : > { %v1670_v60 = vpop.eup %1669  ;;  %1513 = vmatprep.mubr.f32.mxu1 %v2227_v4  ;;  %v888_v47 = vadd.f32 1.0, %v1668_v58 }
 0x199   : > { %v887_v34 = vadd.f32 1.0, %v1670_v60 }
 0x19b   : > { %v1672_v49 = vpop.eup %1671  ;;  %1514 = vmatmul.mubr.f32.gmra.mrb[14].mxu1 %v2231_v6  ;;  %1683 = vrcp.f32 %v887_v34 }
 0x19c   : > { %v1674_v62 = vpop.eup %1673  ;;  %1516 = vmatprep.mubr.f32.mxu1 %v2235_v8  ;;  %1685 = vrcp.f32 %v888_v47  ;;  %v890_v0 = vadd.f32 1.0, %v1672_v49 }
 0x19d   : > { %v1676_v50 = vpop.eup %1675  ;;  %990 = vperm.xlu0 %1657, %v1674_v62  }
 0x19e   : > { %v1678_v51 = vpop.eup %1677  ;;  %1687 = vrcp.f32 %v890_v0 }
 0x19f   : > { %1517 = vmatmul.mubr.f32.gmra.mrb[16].mxu1 %v2239_v10  ;;  %v889_v2 = vadd.f32 1.0, %v1678_v51 }
 0x1a0   : > { %v1680_v52 = vpop.eup %1679  ;;  %1519 = vmatprep.mubr.f32.mxu1 %v2243_v15 }
 0x1a1   : > { %1689 = vrcp.f32 %v889_v2  ;;  %1000 = vperm.xlu1 %1658, %v1680_v52   ;;  %985 = vperm.xlu0 %1657, %v1676_v50   ;;  %v1682_v4 = vpop.eup %1681 }
 0x1a3   : > { %1520 = vmatmul.mubr.f32.gmra.mrb[18].mxu1 %v2247_v18  ;;  %v458_v18 = vld [vmem:[%s2552_s4] sm:$0x1] }
 0x1a4   : > { %1522 = vmatprep.mubr.f32.mxu1 %v2251_v21 }
 0x1a5   : > { %v1684_v6 = vpop.eup %1683  ;;  %995 = vperm.xlu1 %1658, %v1682_v4  }
 0x1a6   : > { %v1686_v8 = vpop.eup %1685  ;;  %1005 = vperm.xlu0 %1657, %v1684_v6  }
 0x1a7   : > { %1523 = vmatmul.mubr.f32.gmra.mrb[20].mxu1 %v2255_v24 }
 0x1a8   : > { %1525 = vmatprep.mubr.f32.mxu1 %v2259_v26  ;;  %v1688_v10 = vpop.eup %1687 }
 0x1a9   : > { %1010 = vperm.xlu1 %1658, %v1686_v8  }
 0x1ab   : > { %v1690_v15 = vpop.eup %1689  ;;  %1526 = vmatmul.mubr.f32.gmra.mrb[22].mxu1 %v2263_v29 }
 0x1ac   : > { %1528 = vmatprep.mubr.f32.mxu1 %v2267_v32  ;;  %1015 = vperm.xlu0 %1657, %v1690_v15  }
 0x1ad   : > { %1020 = vperm.xlu1 %1658, %v1688_v10  }
 0x1af   : > { %1529 = vmatmul.mubr.f32.gmra.mrb[24].mxu1 %v2271_v35  ;;  %v981_v35 = vsub.s32 0, %v980_v5 }
 0x21c   : > { %v991_v59 = vpop.permute.xlu0 %990 }
 0x220   : > { %v1001_v61 = vpop.permute.xlu1 %1000  ;;  %v986_v3 = vpop.permute.xlu0 %985 }
 0x224   : > { %v996_v32 = vpop.permute.xlu1 %995 }
 0x225   : > { %v1006_v37 = vpop.permute.xlu0 %1005 }
 0x228   : > { %v1011_v7 = vpop.permute.xlu1 %1010 }
 0x22b   : > { %v1016_v38 = vpop.permute.xlu0 %1015 }
 0x22c   : > { %v1021_v36 = vpop.permute.xlu1 %1020 }
 0x236   : > { %v529_v21 = vpop.f32.mrb[0].mxu1 }
 0x237   : > { %v530_v54 = vadd.f32 %v529_v21, %v458_v18  ;;  %v1450_v24 = vpop.f32.mrb[1].mxu1 }
 0x239   : > { %v533_v57 = vsub.f32 0.0, %v530_v54 }
 0x23b   : > { %v534_v26 = vmul.f32 1.442695, %v533_v57 }
 0x23d   : > { %1691 = vpow2.f32 %v534_v26 }
 0x247   : > { %v1692_v63 = vpop.eup %1691 }
 0x248   : > { %v536_v29 = vadd.f32 1.0, %v1692_v63 }
 0x24a   : > { %1693 = vrcp.f32 %v536_v29 }
 0x254   : > { %v1694_v9 = vpop.eup %1693 }
 0x255   : > { %v2371_v14 = vrot.slane %v1694_v9, %v981_v35 }
 0x256   : > { %v1497_v41 = vpop.f32.mrb[2].mxu1 }
 0x257   : > { %v1144_v17 = vadd.f32 %v991_v59, %v2371_v14  ;;  %v1146_v19 = vadd.f32 %v1001_v61, %v2371_v14  ;;  %v1145_v22 = vadd.f32 %v996_v32, %v2371_v14  ;;  %v1143_v25 = vadd.f32 %v986_v3, %v2371_v14  ;;  %v668_v44 = vpop.f32.mrb[3].mxu1 }
 0x258   : > { %v1148_v28 = vadd.f32 %v1011_v7, %v2371_v14  ;;  %v1147_v31 = vadd.f32 %v1006_v37, %v2371_v14  ;;  %v674_v48 = vadd.f32 %v1497_v41, %v2335_v45  ;;  %v669_v33 = vadd.f32 %v2335_v45, %v668_v44 }
 0x259   : > { %v1176_v39 = vmul.f32 %v1144_v17, %v2106_v12  ;;  %v1178_v53 = vmul.f32 %v1146_v19, %v2114_v16  ;;  %v1177_v40 = vmul.f32 %v1145_v22, %v2109_v13  ;;  %v1175_v42 = vmul.f32 %v1143_v25, %v2103_v11 }
 0x25a   : > { %v1180_v56 = vmul.f32 %v1148_v28, %v2129_v23  ;;  %v1179_v43 = vmul.f32 %v1147_v31, %v2125_v20  ;;  %v796_v46 = vsub.f32 0.0, %v674_v48  ;;  %v795_v55 = vsub.f32 0.0, %v669_v33  ;;  %v1500_v58 = vpop.f32.mrb[4].mxu1 }
 0x25b   : > { %1208 = vst [vmem:[%s2389_s9 + $0x8] sm:$0xff] %v1176_v39  ;;  %1210 = vst [vmem:[%s2389_s9 + $0x18] sm:$0xff] %v1178_v53  ;;  %v1150_v11 = vadd.f32 %v1021_v36, %v2371_v14  ;;  %v1149_v12 = vadd.f32 %v1016_v38, %v2371_v14  ;;  %v684_v13 = vadd.f32 %v1500_v58, %v2335_v45  ;;  %v678_v16 = vpop.f32.mrb[5].mxu1 }
 0x25c   : > { %1209 = vst [vmem:[%s2389_s9 + $0x10] sm:$0xff] %v1177_v40  ;;  %1207 = vst [vmem:[%s2389_s9] sm:$0xff] %v1175_v42  ;;  %v837_v20 = vmul.f32 1.442695, %v796_v46  ;;  %v835_v23 = vmul.f32 1.442695, %v795_v55  ;;  %v679_v60 = vadd.f32 %v2335_v45, %v678_v16 }
 0x25d   : > { %1212 = vst [vmem:[%s2389_s9 + $0x28] sm:$0xff] %v1180_v56  ;;  %1211 = vst [vmem:[%s2389_s9 + $0x20] sm:$0xff] %v1179_v43  ;;  %v1182_v47 = vmul.f32 %v1150_v11, %v2144_v30  ;;  %v1181_v34 = vmul.f32 %v1149_v12, %v2140_v27  ;;  %v798_v49 = vsub.f32 0.0, %v684_v13 }
 0x25e   : > { %1695 = vpow2.f32 %v837_v20  ;;  %v797_v62 = vsub.f32 0.0, %v679_v60  ;;  %v1503_v0 = vpop.f32.mrb[6].mxu1 }
 0x25f   : > { %1697 = vpow2.f32 %v835_v23  ;;  %1214 = vst [vmem:[%s2389_s9 + $0x38] sm:$0xff] %v1182_v47  ;;  %1213 = vst [vmem:[%s2389_s9 + $0x30] sm:$0xff] %v1181_v34  ;;  %v841_v50 = vmul.f32 1.442695, %v798_v49  ;;  %v694_v51 = vadd.f32 %v1503_v0, %v2335_v45  ;;  %v688_v2 = vpop.f32.mrb[7].mxu1 }
 0x260   : > { %v839_v52 = vmul.f32 1.442695, %v797_v62  ;;  %v689_v4 = vadd.f32 %v2335_v45, %v688_v2 }
 0x261   : > { %1699 = vpow2.f32 %v841_v50  ;;  %v800_v6 = vsub.f32 0.0, %v694_v51 }
 0x262   : > { %1701 = vpow2.f32 %v839_v52  ;;  %v799_v30 = vsub.f32 0.0, %v689_v4  ;;  %v1506_v8 = vpop.f32.mrb[8].mxu1 }
 0x263   : > { %v845_v27 = vmul.f32 1.442695, %v800_v6  ;;  %v704_v10 = vadd.f32 %v1506_v8, %v2335_v45  ;;  %v698_v15 = vpop.f32.mrb[9].mxu1 }
 0x264   : > { %v843_v18 = vmul.f32 1.442695, %v799_v30  ;;  %v699_v21 = vadd.f32 %v2335_v45, %v698_v15 }
 0x265   : > { %1703 = vpow2.f32 %v845_v27  ;;  %v802_v54 = vsub.f32 0.0, %v704_v10 }
 0x266   : > { %1705 = vpow2.f32 %v843_v18  ;;  %v801_v24 = vsub.f32 0.0, %v699_v21  ;;  %v1509_v57 = vpop.f32.mrb[10].mxu1 }
 0x267   : > { %v849_v26 = vmul.f32 1.442695, %v802_v54  ;;  %v714_v59 = vadd.f32 %v1509_v57, %v2335_v45  ;;  %v708_v61 = vpop.f32.mrb[11].mxu1 }
 0x268   : > { %v1696_v63 = vpop.eup %1695  ;;  %v847_v29 = vmul.f32 1.442695, %v801_v24  ;;  %v709_v1 = vadd.f32 %v2335_v45, %v708_v61 }
 0x269   : > { %v1698_v32 = vpop.eup %1697  ;;  %v892_v3 = vadd.f32 1.0, %v1696_v63  ;;  %1707 = vpow2.f32 %v849_v26  ;;  %v804_v5 = vsub.f32 0.0, %v714_v59 }
 0x26a   : > { %v891_v35 = vadd.f32 1.0, %v1698_v32  ;;  %1709 = vpow2.f32 %v847_v29  ;;  %v803_v7 = vsub.f32 0.0, %v709_v1  ;;  %v1512_v37 = vpop.f32.mrb[12].mxu1 }
 0x26b   : > { %v1700_v9 = vpop.eup %1699  ;;  %1711 = vrcp.f32 %v892_v3  ;;  %v853_v41 = vmul.f32 1.442695, %v804_v5  ;;  %v724_v17 = vadd.f32 %v1512_v37, %v2335_v45  ;;  %v718_v19 = vpop.f32.mrb[13].mxu1 }
 0x26c   : > { %v1702_v22 = vpop.eup %1701  ;;  %1713 = vrcp.f32 %v891_v35  ;;  %v894_v25 = vadd.f32 1.0, %v1700_v9  ;;  %v851_v44 = vmul.f32 1.442695, %v803_v7  ;;  %v719_v28 = vadd.f32 %v2335_v45, %v718_v19 }
 0x26d   : > { %v893_v31 = vadd.f32 1.0, %v1702_v22  ;;  %1715 = vpow2.f32 %v853_v41  ;;  %v806_v48 = vsub.f32 0.0, %v724_v17 }
 0x26e   : > { %1717 = vrcp.f32 %v894_v25  ;;  %v805_v33 = vsub.f32 0.0, %v719_v28  ;;  %v1515_v36 = vpop.f32.mrb[14].mxu1 }
 0x26f   : > { %v1704_v38 = vpop.eup %1703  ;;  %1719 = vrcp.f32 %v893_v31  ;;  %v857_v39 = vmul.f32 1.442695, %v806_v48  ;;  %v734_v53 = vadd.f32 %v1515_v36, %v2335_v45  ;;  %v728_v40 = vpop.f32.mrb[15].mxu1 }
 0x270   : > { %v1706_v42 = vpop.eup %1705  ;;  %v896_v56 = vadd.f32 1.0, %v1704_v38  ;;  %1721 = vpow2.f32 %v851_v44  ;;  %v855_v43 = vmul.f32 1.442695, %v805_v33  ;;  %v729_v46 = vadd.f32 %v2335_v45, %v728_v40 }
 0x271   : > { %v895_v55 = vadd.f32 1.0, %v1706_v42  ;;  %1723 = vpow2.f32 %v857_v39  ;;  %v808_v58 = vsub.f32 0.0, %v734_v53 }
 0x272   : > { %1725 = vrcp.f32 %v896_v56  ;;  %v807_v11 = vsub.f32 0.0, %v729_v46  ;;  %v1518_v12 = vpop.f32.mrb[16].mxu1 }
 0x273   : > { %v1708_v13 = vpop.eup %1707  ;;  %1727 = vrcp.f32 %v895_v55  ;;  %v861_v16 = vmul.f32 1.442695, %v808_v58  ;;  %v744_v20 = vadd.f32 %v1518_v12, %v2335_v45  ;;  %v738_v23 = vpop.f32.mrb[17].mxu1 }
 0x274   : > { %v1710_v60 = vpop.eup %1709  ;;  %v898_v47 = vadd.f32 1.0, %v1708_v13  ;;  %1729 = vpow2.f32 %v855_v43  ;;  %v859_v34 = vmul.f32 1.442695, %v807_v11  ;;  %v739_v49 = vadd.f32 %v2335_v45, %v738_v23 }
 0x275   : > { %v1712_v62 = vpop.eup %1711  ;;  %v897_v0 = vadd.f32 1.0, %v1710_v60  ;;  %1731 = vpow2.f32 %v861_v16  ;;  %v810_v50 = vsub.f32 0.0, %v744_v20 }
 0x276   : > { %v1714_v51 = vpop.eup %1713  ;;  %1733 = vrcp.f32 %v898_v47  ;;  %v809_v2 = vsub.f32 0.0, %v739_v49  ;;  %1030 = vperm.xlu1 %1658, %v1712_v62   ;;  %v1521_v52 = vpop.f32.mrb[18].mxu1 }
 0x277   : > { %v1716_v4 = vpop.eup %1715  ;;  %1735 = vrcp.f32 %v897_v0  ;;  %v865_v6 = vmul.f32 1.442695, %v810_v50  ;;  %v754_v30 = vadd.f32 %v1521_v52, %v2335_v45  ;;  %1025 = vperm.xlu0 %1657, %v1714_v51   ;;  %v748_v8 = vpop.f32.mrb[19].mxu1 }
 0x278   : > { %v1718_v27 = vpop.eup %1717  ;;  %v900_v10 = vadd.f32 1.0, %v1716_v4  ;;  %1737 = vpow2.f32 %v859_v34  ;;  %v863_v15 = vmul.f32 1.442695, %v809_v2  ;;  %v749_v18 = vadd.f32 %v2335_v45, %v748_v8 }
 0x279   : > { %v1720_v21 = vpop.eup %1719  ;;  %1739 = vpow2.f32 %v865_v6  ;;  %v812_v54 = vsub.f32 0.0, %v754_v30 }
 0x27a   : > { %v1722_v24 = vpop.eup %1721  ;;  %1741 = vrcp.f32 %v900_v10  ;;  %v811_v57 = vsub.f32 0.0, %v749_v18  ;;  %1040 = vperm.xlu1 %1658, %v1718_v27   ;;  %v1524_v26 = vpop.f32.mrb[20].mxu1 }
 0x27b   : > { %v1724_v59 = vpop.eup %1723  ;;  %v899_v61 = vadd.f32 1.0, %v1722_v24  ;;  %1743 = vpow2.f32 %v863_v15  ;;  %v869_v63 = vmul.f32 1.442695, %v812_v54  ;;  %v764_v29 = vadd.f32 %v1524_v26, %v2335_v45  ;;  %1035 = vperm.xlu0 %1657, %v1720_v21   ;;  %v758_v1 = vpop.f32.mrb[21].mxu1 }
 0x27c   : > { %v1726_v32 = vpop.eup %1725  ;;  %v902_v3 = vadd.f32 1.0, %v1724_v59  ;;  %v867_v5 = vmul.f32 1.442695, %v811_v57  ;;  %v759_v35 = vadd.f32 %v2335_v45, %v758_v1 }
 0x27d   : > { %v1728_v7 = vpop.eup %1727  ;;  %1745 = vrcp.f32 %v899_v61  ;;  %v814_v37 = vsub.f32 0.0, %v764_v29 }
 0x27e   : > { %v1730_v9 = vpop.eup %1729  ;;  %1747 = vrcp.f32 %v902_v3  ;;  %v813_v41 = vsub.f32 0.0, %v759_v35  ;;  %1050 = vperm.xlu1 %1658, %v1726_v32   ;;  %v1527_v17 = vpop.f32.mrb[22].mxu1 }
 0x27f   : > { %v1732_v19 = vpop.eup %1731  ;;  %v901_v22 = vadd.f32 1.0, %v1730_v9  ;;  %1749 = vpow2.f32 %v869_v63  ;;  %v873_v25 = vmul.f32 1.442695, %v814_v37  ;;  %v774_v44 = vadd.f32 %v1527_v17, %v2335_v45  ;;  %1045 = vperm.xlu0 %1657, %v1728_v7   ;;  %v768_v28 = vpop.f32.mrb[23].mxu1 }
 0x280   : > { %v1734_v31 = vpop.eup %1733  ;;  %v904_v48 = vadd.f32 1.0, %v1732_v19  ;;  %1751 = vpow2.f32 %v867_v5  ;;  %v871_v33 = vmul.f32 1.442695, %v813_v41  ;;  %v769_v36 = vadd.f32 %v2335_v45, %v768_v28 }
 0x281   : > { %v1736_v38 = vpop.eup %1735  ;;  %1753 = vrcp.f32 %v901_v22  ;;  %v816_v39 = vsub.f32 0.0, %v774_v44  ;;  %v1791_v22 = vld [vmem:[%s2076_s18 + $0x48] sm:$0xff]  ;;  %v1792_v44 = vld [vmem:[%s2076_s18 + $0x40] sm:$0xff] }
 0x282   : > { %v1738_v53 = vpop.eup %1737  ;;  %1755 = vrcp.f32 %v904_v48  ;;  %v815_v40 = vsub.f32 0.0, %v769_v36  ;;  %1060 = vperm.xlu1 %1658, %v1734_v31   ;;  %v1530_v42 = vpop.f32.mrb[24].mxu1 }
 0x283   : > { %v1740_v56 = vpop.eup %1739  ;;  %v903_v43 = vadd.f32 1.0, %v1738_v53  ;;  %1757 = vpow2.f32 %v873_v25  ;;  %v877_v46 = vmul.f32 1.442695, %v816_v39  ;;  %v784_v55 = vadd.f32 %v1530_v42, %v2335_v45  ;;  %1055 = vperm.xlu0 %1657, %v1736_v38   ;;  %v778_v58 = vpop.f32.mrb[25].mxu1  ;;  %v1793_v38 = vld [vmem:[%s2076_s18 + $0x58] sm:$0xff]  ;;  %v1794_v53 = vld [vmem:[%s2076_s18 + $0x50] sm:$0xff] }
 0x284   : > { %v1742_v11 = vpop.eup %1741  ;;  %v906_v12 = vadd.f32 1.0, %v1740_v56  ;;  %1759 = vpow2.f32 %v871_v33  ;;  %v779_v13 = vadd.f32 %v2335_v45, %v778_v58  ;;  %v875_v20 = vmul.f32 1.442695, %v815_v40 }
 0x285   : > { %v1744_v16 = vpop.eup %1743  ;;  %1761 = vrcp.f32 %v903_v43  ;;  %v818_v23 = vsub.f32 0.0, %v784_v55  ;;  %v1795_v55 = vld [vmem:[%s2076_s18 + $0x68] sm:$0xff] }
 0x286   : > { %1763 = vrcp.f32 %v906_v12  ;;  %v905_v60 = vadd.f32 1.0, %v1744_v16  ;;  %v817_v47 = vsub.f32 0.0, %v779_v13  ;;  %1070 = vperm.xlu1 %1658, %v1742_v11   ;;  %v1796_v11 = vld [vmem:[%s2076_s18 + $0x60] sm:$0xff] }
 0x287   : > { %v1746_v34 = vpop.eup %1745  ;;  %1765 = vpow2.f32 %v877_v46  ;;  %v881_v49 = vmul.f32 1.442695, %v818_v23 }
 0x288   : > { %v1748_v62 = vpop.eup %1747  ;;  %1767 = vrcp.f32 %v905_v60  ;;  %v879_v0 = vmul.f32 1.442695, %v817_v47  ;;  %1065 = vperm.xlu0 %1657, %v1746_v34   ;;  %v1797_v60 = vld [vmem:[%s2076_s18 + $0x78] sm:$0xff]  ;;  %v1798_v34 = vld [vmem:[%s2076_s18 + $0x70] sm:$0xff] }
 0x289   : > { %v1750_v50 = vpop.eup %1749  ;;  %1769 = vpow2.f32 %v875_v20 }
 0x28a   : > { %v1752_v51 = vpop.eup %1751  ;;  %v908_v2 = vadd.f32 1.0, %v1750_v50  ;;  %1771 = vpow2.f32 %v881_v49  ;;  %1080 = vperm.xlu1 %1658, %v1748_v62  }
 0x28b   : > { %v1754_v45 = vpop.eup %1753  ;;  %v907_v52 = vadd.f32 1.0, %v1752_v51  ;;  %1773 = vpow2.f32 %v879_v0  ;;  %v1799_v51 = vld [vmem:[%s2076_s18 + $0x88] sm:$0xff] }
 0x28c   : > { %v1756_v4 = vpop.eup %1755  ;;  %1775 = vrcp.f32 %v908_v2  ;;  %1075 = vperm.xlu0 %1657, %v1754_v45  }
 0x28d   : > { %v1758_v6 = vpop.eup %1757  ;;  %1777 = vrcp.f32 %v907_v52 }
 0x28e   : > { %v1760_v30 = vpop.eup %1759  ;;  %v910_v8 = vadd.f32 1.0, %v1758_v6  ;;  %1090 = vperm.xlu1 %1658, %v1756_v4   ;;  %v1800_v4 = vld [vmem:[%s2076_s18 + $0x80] sm:$0xff] }
 0x28f   : > { %v1762_v27 = vpop.eup %1761  ;;  %v909_v10 = vadd.f32 1.0, %v1760_v30 }
 0x290   : > { %v1764_v15 = vpop.eup %1763  ;;  %1779 = vrcp.f32 %v910_v8  ;;  %1085 = vperm.xlu0 %1657, %v1762_v27   ;;  %v1801_v27 = vld [vmem:[%s2076_s18 + $0x98] sm:$0xff] }
 0x291   : > { %v1766_v18 = vpop.eup %1765  ;;  %1781 = vrcp.f32 %v909_v10 }
 0x292   : > { %v1768_v21 = vpop.eup %1767  ;;  %v912_v54 = vadd.f32 1.0, %v1766_v18  ;;  %1100 = vperm.xlu1 %1658, %v1764_v15  }
 0x293   : > { %v1770_v24 = vpop.eup %1769 }
 0x294   : > { %v1772_v57 = vpop.eup %1771  ;;  %1783 = vrcp.f32 %v912_v54  ;;  %v911_v26 = vadd.f32 1.0, %v1770_v24  ;;  %1095 = vperm.xlu0 %1657, %v1768_v21   ;;  %v1802_v21 = vld [vmem:[%s2076_s18 + $0x90] sm:$0xff] }
 0x295   : > { %v1774_v59 = vpop.eup %1773  ;;  %v914_v61 = vadd.f32 1.0, %v1772_v57 }
 0x296   : > { %v1776_v63 = vpop.eup %1775  ;;  %1785 = vrcp.f32 %v911_v26  ;;  %v913_v29 = vadd.f32 1.0, %v1774_v59  ;;  %v1803_v26 = vld [vmem:[%s2076_s18 + $0xa8] sm:$0xff] }
 0x297   : > { %v1778_v1 = vpop.eup %1777  ;;  %1787 = vrcp.f32 %v914_v61  ;;  %1110 = vperm.xlu1 %1658, %v1776_v63  }
 0x298   : > { %1789 = vrcp.f32 %v913_v29  ;;  %1105 = vperm.xlu0 %1657, %v1778_v1   ;;  %v1804_v29 = vld [vmem:[%s2076_s18 + $0xa0] sm:$0xff] }
 0x29a   : > { %v1780_v32 = vpop.eup %1779 }
 0x29b   : > { %v1782_v3 = vpop.eup %1781  ;;  %1120 = vperm.xlu1 %1658, %v1780_v32  }
 0x29c   : > { %1115 = vperm.xlu0 %1657, %v1782_v3  }
 0x29e   : > { %v1784_v5 = vpop.eup %1783 }
 0x29f   : > { %1130 = vperm.xlu1 %1658, %v1784_v5   ;;  %v1805_v5 = vld [vmem:[%s2076_s18 + $0xb8] sm:$0xff] }
 0x2a0   : > { %v1786_v35 = vpop.eup %1785 }
 0x2a1   : > { %v1788_v7 = vpop.eup %1787  ;;  %1125 = vperm.xlu0 %1657, %v1786_v35  }
 0x2a2   : > { %v1790_v37 = vpop.eup %1789 }
 0x2a3   : > { %1140 = vperm.xlu1 %1658, %v1788_v7  }
 0x2a5   : > { %1135 = vperm.xlu0 %1657, %v1790_v37   ;;  %v1806_v37 = vld [vmem:[%s2076_s18 + $0xb0] sm:$0xff] }
 0x2f5   : > { %v1031_v9 = vpop.permute.xlu1 %1030 }
 0x2f6   : > { %v1152_v41 = vadd.f32 %v1031_v9, %v2371_v14  ;;  %v1026_v17 = vpop.permute.xlu0 %1025 }
 0x2f7   : > { %v1151_v19 = vadd.f32 %v1026_v17, %v2371_v14 }
 0x2f8   : > { %v1184_v25 = vmul.f32 %v1791_v22, %v1152_v41 }
 0x2f9   : > { %v1183_v28 = vmul.f32 %v1792_v44, %v1151_v19  ;;  %v1041_v31 = vpop.permute.xlu1 %1040 }
 0x2fa   : > { %1216 = vst [vmem:[%s2389_s9 + $0x48] sm:$0xff] %v1184_v25  ;;  %v1154_v48 = vadd.f32 %v1041_v31, %v2371_v14  ;;  %v1036_v33 = vpop.permute.xlu0 %1035  ;;  %v1807_v25 = vld [vmem:[%s2076_s18 + $0xc8] sm:$0xff] }
 0x2fb   : > { %1215 = vst [vmem:[%s2389_s9 + $0x40] sm:$0xff] %v1183_v28  ;;  %v1153_v36 = vadd.f32 %v1036_v33, %v2371_v14  ;;  %v1808_v28 = vld [vmem:[%s2076_s18 + $0xc0] sm:$0xff] }
 0x2fc   : > { %v1186_v39 = vmul.f32 %v1793_v38, %v1154_v48 }
 0x2fd   : > { %v1185_v40 = vmul.f32 %v1794_v53, %v1153_v36  ;;  %v1051_v42 = vpop.permute.xlu1 %1050 }
 0x2fe   : > { %1218 = vst [vmem:[%s2389_s9 + $0x58] sm:$0xff] %v1186_v39  ;;  %v1156_v56 = vadd.f32 %v1051_v42, %v2371_v14  ;;  %v1046_v43 = vpop.permute.xlu0 %1045  ;;  %v1809_v39 = vld [vmem:[%s2076_s18 + $0xd8] sm:$0xff] }
 0x2ff   : > { %1217 = vst [vmem:[%s2389_s9 + $0x50] sm:$0xff] %v1185_v40  ;;  %v1155_v46 = vadd.f32 %v1046_v43, %v2371_v14  ;;  %v1810_v40 = vld [vmem:[%s2076_s18 + $0xd0] sm:$0xff] }
 0x300   : > { %v1188_v58 = vmul.f32 %v1795_v55, %v1156_v56  ;;  %v1811_v55 = vld [vmem:[%s2076_s18 + $0xe8] sm:$0xff] }
 0x301   : > { %v1187_v12 = vmul.f32 %v1796_v11, %v1155_v46  ;;  %v1061_v13 = vpop.permute.xlu1 %1060 }
 0x302   : > { %1220 = vst [vmem:[%s2389_s9 + $0x68] sm:$0xff] %v1188_v58  ;;  %v1158_v16 = vadd.f32 %v1061_v13, %v2371_v14  ;;  %v1056_v20 = vpop.permute.xlu0 %1055  ;;  %v1812_v13 = vld [vmem:[%s2076_s18 + $0xe0] sm:$0xff] }
 0x303   : > { %1219 = vst [vmem:[%s2389_s9 + $0x60] sm:$0xff] %v1187_v12  ;;  %v1157_v23 = vadd.f32 %v1056_v20, %v2371_v14 }
 0x304   : > { %v1190_v47 = vmul.f32 %v1797_v60, %v1158_v16  ;;  %v1813_v60 = vld [vmem:[%s2076_s18 + $0xf8] sm:$0xff] }
 0x305   : > { %v1189_v49 = vmul.f32 %v1798_v34, %v1157_v23  ;;  %v1071_v62 = vpop.permute.xlu1 %1070 }
 0x306   : > { %1222 = vst [vmem:[%s2389_s9 + $0x78] sm:$0xff] %v1190_v47  ;;  %v1160_v0 = vadd.f32 %v1071_v62, %v2371_v14 }
 0x307   : > { %1221 = vst [vmem:[%s2389_s9 + $0x70] sm:$0xff] %v1189_v49  ;;  %v1066_v50 = vpop.permute.xlu0 %1065  ;;  %v1814_v49 = vld [vmem:[%s2076_s18 + $0xf0] sm:$0xff] }
 0x308   : > { %v1192_v2 = vmul.f32 %v1799_v51, %v1160_v0  ;;  %v1159_v45 = vadd.f32 %v1066_v50, %v2371_v14 }
 0x309   : > { %v1081_v52 = vpop.permute.xlu1 %1080 }
 0x30a   : > { %1224 = vst [vmem:[%s2389_s9 + $0x88] sm:$0xff] %v1192_v2  ;;  %v1191_v6 = vmul.f32 %v1800_v4, %v1159_v45  ;;  %v1162_v30 = vadd.f32 %v1081_v52, %v2371_v14 }
 0x30b   : > { %v1076_v8 = vpop.permute.xlu0 %1075 }
 0x30c   : > { %1223 = vst [vmem:[%s2389_s9 + $0x80] sm:$0xff] %v1191_v6  ;;  %v1194_v10 = vmul.f32 %v1801_v27, %v1162_v30  ;;  %v1161_v15 = vadd.f32 %v1076_v8, %v2371_v14 }
 0x30d   : > { %v1091_v18 = vpop.permute.xlu1 %1090 }
 0x30e   : > { %1226 = vst [vmem:[%s2389_s9 + $0x98] sm:$0xff] %v1194_v10  ;;  %v1193_v54 = vmul.f32 %v1802_v21, %v1161_v15  ;;  %v1164_v24 = vadd.f32 %v1091_v18, %v2371_v14 }
 0x30f   : > { %v1086_v57 = vpop.permute.xlu0 %1085 }
 0x310   : > { %1225 = vst [vmem:[%s2389_s9 + $0x90] sm:$0xff] %v1193_v54  ;;  %v1196_v59 = vmul.f32 %v1803_v26, %v1164_v24  ;;  %v1163_v61 = vadd.f32 %v1086_v57, %v2371_v14 }
 0x311   : > { %v1101_v63 = vpop.permute.xlu1 %1100 }
 0x312   : > { %1228 = vst [vmem:[%s2389_s9 + $0xa8] sm:$0xff] %v1196_v59  ;;  %v1195_v1 = vmul.f32 %v1804_v29, %v1163_v61  ;;  %v1166_v32 = vadd.f32 %v1101_v63, %v2371_v14 }
 0x313   : > { %v1096_v3 = vpop.permute.xlu0 %1095 }
 0x314   : > { %1227 = vst [vmem:[%s2389_s9 + $0xa0] sm:$0xff] %v1195_v1  ;;  %v1198_v35 = vmul.f32 %v1805_v5, %v1166_v32  ;;  %v1165_v7 = vadd.f32 %v1096_v3, %v2371_v14 }
 0x316   : > { %1230 = vst [vmem:[%s2389_s9 + $0xb8] sm:$0xff] %v1198_v35  ;;  %v1197_v9 = vmul.f32 %v1806_v37, %v1165_v7  ;;  %v1111_v41 = vpop.permute.xlu1 %1110 }
 0x317   : > { %v1168_v17 = vadd.f32 %v1111_v41, %v2371_v14  ;;  %v1106_v19 = vpop.permute.xlu0 %1105 }
 0x318   : > { %1229 = vst [vmem:[%s2389_s9 + $0xb0] sm:$0xff] %v1197_v9  ;;  %v1167_v22 = vadd.f32 %v1106_v19, %v2371_v14 }
 0x319   : > { %v1200_v44 = vmul.f32 %v1807_v25, %v1168_v17 }
 0x31a   : > { %v1199_v31 = vmul.f32 %v1808_v28, %v1167_v22  ;;  %v1121_v48 = vpop.permute.xlu1 %1120 }
 0x31b   : > { %1232 = vst [vmem:[%s2389_s9 + $0xc8] sm:$0xff] %v1200_v44  ;;  %v1170_v33 = vadd.f32 %v1121_v48, %v2371_v14  ;;  %v1116_v36 = vpop.permute.xlu0 %1115 }
 0x31c   : > { %1231 = vst [vmem:[%s2389_s9 + $0xc0] sm:$0xff] %v1199_v31  ;;  %v1169_v38 = vadd.f32 %v1116_v36, %v2371_v14 }
 0x31d   : > { %v1202_v53 = vmul.f32 %v1809_v39, %v1170_v33 }
 0x31e   : > { %v1201_v42 = vmul.f32 %v1810_v40, %v1169_v38  ;;  %v1131_v56 = vpop.permute.xlu1 %1130 }
 0x31f   : > { %1234 = vst [vmem:[%s2389_s9 + $0xd8] sm:$0xff] %v1202_v53  ;;  %v1172_v43 = vadd.f32 %v1131_v56, %v2371_v14 }
 0x320   : > { %1233 = vst [vmem:[%s2389_s9 + $0xd0] sm:$0xff] %v1201_v42  ;;  %v1126_v46 = vpop.permute.xlu0 %1125 }
 0x321   : > { %v1204_v58 = vmul.f32 %v1811_v55, %v1172_v43  ;;  %v1171_v11 = vadd.f32 %v1126_v46, %v2371_v14 }
 0x322   : > { %v1141_v12 = vpop.permute.xlu1 %1140 }
 0x323   : > { %1236 = vst [vmem:[%s2389_s9 + $0xe8] sm:$0xff] %v1204_v58  ;;  %v1203_v16 = vmul.f32 %v1812_v13, %v1171_v11  ;;  %v1174_v20 = vadd.f32 %v1141_v12, %v2371_v14 }
 0x324   : > { %v1136_v23 = vpop.permute.xlu0 %1135 }
 0x325   : > { %1235 = vst [vmem:[%s2389_s9 + $0xe0] sm:$0xff] %v1203_v16  ;;  %v1206_v47 = vmul.f32 %v1813_v60, %v1174_v20  ;;  %v1173_v34 = vadd.f32 %v1136_v23, %v2371_v14 }
 0x327   : > { %1238 = vst [vmem:[%s2389_s9 + $0xf8] sm:$0xff] %v1206_v47  ;;  %v1205_v62 = vmul.f32 %v1814_v49, %v1173_v34 }
 0x329   : > { %1237 = vst [vmem:[%s2389_s9 + $0xf0] sm:$0xff] %v1205_v62 }
 0x32a   : > { %1858 = shalt.err (!%p1855_p2)
}
 0x32b   : > { %s1859_s18 = scalar_lea.hbm %s2499_s24, 4096  ;;  %s1863_s30 = scalar_lea.hbm %s2555_s7, 8192 }
 0x32c   : > { %p1860_p4 = scmp.ne.s32.totalorder %s2499_s24, %s1859_s18  ;;  %p1864_p9 = scmp.lt.u32.totalorder %s2499_s24, %s2555_s7 }
 0x32d   : > { %p1865_p1 = scmp.lt.u32.totalorder %s1863_s30, %s1859_s18  ;;  %p1867_p6 = scmp.lt.u32.totalorder %s1859_s18, %s2499_s24 }
 0x32e   : > { %p1861_p5 = pnand %p1860_p4, %p2562_p11 }
 0x32f   : > { %p1866_p3 = por %p1865_p1, %p1864_p9 }
 0x330   : > { %p1862_p7 = pneg %p1861_p5 }
 0x331   : > { %p1868_p12 = por %p1867_p6, %p1866_p3 }
 0x333   : > { %p1869_p13 = pnand %p1868_p12, %p1862_p7 }
 0x335   : > { %1872 = shalt.err (!%p1869_p13)
}
 0x336   : > { %s1921_s21 = smov 128   ;;  %s1922_s23 = smov 8  }
 0x337   : > { %1605 = dma.vmem_to_hbm [thread:$0]  (%p2562_p11), %s2501_s17, 4096, %s2499_s24, %s1240_s6, %s1921_s21, %s1921_s21, %s1922_s23  }
 0x338 PF: > { %s1268_s25 = sand.u32 1, %s1899_s26   ;;  %p2563_p8 = scmp.ne.s32.totalorder %s2560_s15, 0 }
 0x339   : > { %p2564_p10 = scmp.ge.s32.totalorder %s1911_s29, 2  ;;  %s1269_s13 = scalar_lea.sflag [#allocation5], %s1268_s25 }
 0x33b   : > { %p1612_p0 = pnand %p2564_p10, %p2563_p8 }
 0x33d   : > { %1894 = dma.done.wait (!%p1612_p0), %s1269_s13, 4096  }
 0x33e   : > { %1896 = vsyncadd (!%p1612_p0), %s1269_s13, 4294963200  ;;  %p22_p2 = scmp.ge.s32.totalorder %s1991_s8, 4   ;;  %s2565_s26 = smov %s1903_s27 }
 0x33f   : > { %s2566_s27 = smov %s1907_s28  ;;  %s2567_s28 = smov %s2003_s11 }
 0x340   : > { %s2568_s29 = smov %s1991_s8  ;;  %24 = sbr.rel (!%p22_p2) target bundleno = 8 (0x8), region = 93 }
 0x347   :  { %1274 = vsyncpa [#allocation4], 1 }
 0x348   :  { %1276 = vsyncpa [#allocation4 + $0x1], 1 }
 0x349   :  { %1277 = vsyncpa [#allocation5], 1 }
 0x34a   :  { %1279 = vsyncpa [#allocation5 + $0x1], 1 }

</bundles_post_ra>
